<compile_context>
chip_gen: v6e
topology: v6e:2x2x1
jax: 0.10.0
libtpu: 0.0.40
codegen_flags: <defaults>
</compile_context>

<pallas_src>
import math

import jax
import jax.numpy as jnp
import numpy as np
from jax.experimental import pallas as pl
from jax.experimental.pallas import tpu as pltpu


# ----------------------------- positional grid --------------------------------
def build_coord_tensor(d):
    # Matches PositionalEncodingImageGrid.build_coord_tensor: ct[i*d+j] = (coords[j], coords[i])
    coords = np.linspace(-1.0, 1.0, d).astype(np.float32)
    x = np.tile(coords[None, :], (d, 1))
    y = np.tile(coords[:, None], (1, d))
    return np.stack((x, y), axis=2).reshape(d * d, 2).astype(np.float32)


# ----------------------------- parameter fusion --------------------------------
def pack_params(params, seq_len, grid_n):
    """One-time exact algebraic fusion of the forward pass into 4 matmuls.

    Derivation (all linear, hence exact):
      t    = mean_s(text_s) @ w_text + b_text
      i    = (mean_r(img_r) + (ct_mean @ w_map + b_map)) @ w_img + b_img
      emb  = 0.5*(t + i)
      h1'  = emb @ w_e1 + b_e1
           = text2d @ W_text_big + img2d @ W_img_big + b1'
      where the seq / region means are absorbed by tiling / repeating the rows of
      0.5/seq * (w_text @ w_e1)  and  0.5/n2 * (w_img @ w_e1).
    """
    f32 = np.float32
    w_text = np.asarray(params["w_text"], f32)           # (wd, E)
    w_img = np.asarray(params["w_img"], f32)             # (C,  E)
    w_e1 = np.asarray(params["w_e1"], f32)                # (E,  E)
    w_e2 = np.asarray(params["w_e2"], f32)                # (E,  H)
    w_head = np.asarray(params["w_head"], f32)            # (H,  L)
    w_map = np.asarray(params["w_map"], f32)               # (2,  C)

    b_text = np.asarray(params["b_text"], f32).reshape(-1)
    b_img = np.asarray(params["b_img"], f32).reshape(-1)
    b_e1 = np.asarray(params["b_e1"], f32).reshape(-1)
    b_e2 = np.asarray(params["b_e2"], f32).reshape(-1)
    b_head = np.asarray(params["b_head"], f32).reshape(-1)
    b_map = np.asarray(params["b_map"], f32).reshape(-1)

    E = w_e1.shape[0]
    H = w_e2.shape[1]
    L = w_head.shape[1]
    n2 = grid_n * grid_n

    # mean positional encoding over the region grid
    ct_mean = build_coord_tensor(grid_n).mean(axis=0)               # (2,)
    pos_mean = ct_mean @ w_map + b_map                               # (C,)

    m_text = 0.5 * (w_text @ w_e1)                                   # (wd, E)
    m_img = 0.5 * (w_img @ w_e1)                                     # (C,  E)
    # row s*wd+w -> m_text[w]/seq   ;   row c*n2+r -> m_img[c]/n2
    w_text_big = np.tile(m_text / float(seq_len), (seq_len, 1))      # (seq*wd, E)
    w_img_big = np.repeat(m_img / float(n2), n2, axis=0)             # (C*n2,  E)

    b1 = (0.5 * (b_text + b_img + pos_mean @ w_img)) @ w_e1 + b_e1   # (E,)

    width = max(E, H, L)
    bias = np.zeros((8, width), f32)                                 # sublane-aligned bias slab
    bias[0, :E] = b1
    bias[1, :H] = b_e2
    bias[2, :L] = b_head

    return dict(
        w_text_big=jnp.asarray(w_text_big),
        w_img_big=jnp.asarray(w_img_big),
        w_e2=jnp.asarray(w_e2),
        w_head=jnp.asarray(w_head),
        bias=jnp.asarray(bias),
        dims=dict(E=E, H=H, L=L, seq=seq_len, n2=n2),
    )


# ----------------------------- Pallas kernel -----------------------------------
def make_kernel(E, H, L):
    def kernel(t_ref, i_ref, wt_ref, wi_ref, we2_ref, wh_ref, b_ref, out_ref):
        f32 = jnp.float32
        # inputs may arrive as bf16 (HBM-traffic halving); upcast on load, accumulate in f32
        x_t = t_ref[...].astype(f32)                                  # (tb, seq*wd)
        x_i = i_ref[...].astype(f32)                                  # (tb, C*n2)

        # stage 1: fused (mean + map_text/map_image + pos-enc + 0.5 avg + map_to_embed_1)
        h1 = (jnp.dot(x_t, wt_ref[...], preferred_element_type=f32)
              + jnp.dot(x_i, wi_ref[...], preferred_element_type=f32)
              + b_ref[0:1, :E])
        h1 = jnp.where(h1 >= 0, h1, 0.1 * h1)                         # LeakyReLU(0.1)

        # stage 2: map_to_embed_2
        h2 = jnp.dot(h1, we2_ref[...], preferred_element_type=f32) + b_ref[1:2, :H]
        h2 = jnp.where(h2 >= 0, h2, 0.1 * h2)

        # stage 3: multi_label_class_head + sigmoid
        logits = jnp.dot(h2, wh_ref[...], preferred_element_type=f32) + b_ref[2:3, :L]
        out_ref[...] = jax.nn.sigmoid(logits)

    return kernel


# ------------------------------- wrapper ----------------------------------------
def _round_up(n, m):
    return ((n + m - 1) // m) * m


def _pick_batch_tile(bs):
    if bs <= 8:
        return bs                       # single tile; block dim == full array dim
    # >= 2 grid steps so both v7x TensorCores get work under "parallel";
    # cap at 2048 rows: double-buffered lane-dense tiles stay far below the
    # 32 MiB default scoped VMEM on v5e/v6e/v7x (v7x has only 64 MiB physical).
    return min(2048, _round_up(pl.cdiv(bs, 2), 8))


def forward(fused, text, text_len, image, *, input_dtype=jnp.bfloat16):
    # text_len is unused by the reference forward (kept only for signature parity).
    del text_len
    bs, seq, wd = text.shape
    C, gh, gw = image.shape[1], image.shape[2], image.shape[3]
    n2 = gh * gw
    dims = fused["dims"]
    E, H, L = dims["E"], dims["H"], dims["L"]
    assert dims["seq"] == seq and dims["n2"] == n2, "pack_params seq/grid mismatch"

    # lane-dense 2-D activations (free row-major reshapes, no transpose / HBM round trip)
    text2d = text.reshape(bs, seq * wd).astype(input_dtype)
    img2d = image.reshape(bs, C * n2).astype(input_dtype)

    tb = _pick_batch_tile(bs)
    bs_pad = pl.cdiv(bs, tb) * tb
    if bs_pad != bs:                       # zero-pad instead of asserting bs % tb == 0
        text2d = jnp.pad(text2d, ((0, bs_pad - bs), (0, 0)))
        img2d = jnp.pad(img2d, ((0, bs_pad - bs), (0, 0)))

    out = pl.pallas_call(
        make_kernel(E, H, L),
        out_shape=jax.ShapeDtypeStruct((bs_pad, L), jnp.float32),
        grid=(bs_pad // tb,),
        in_specs=[
            pl.BlockSpec((tb, seq * wd), lambda i: (i, 0)),
            pl.BlockSpec((tb, C * n2), lambda i: (i, 0)),
            # weights/biases: constant block index -> DMA'd once, resident across steps
            pl.BlockSpec(fused["w_text_big"].shape, lambda i: (0, 0)),
            pl.BlockSpec(fused["w_img_big"].shape, lambda i: (0, 0)),
            pl.BlockSpec(fused["w_e2"].shape, lambda i: (0, 0)),
            pl.BlockSpec(fused["w_head"].shape, lambda i: (0, 0)),
            pl.BlockSpec(fused["bias"].shape, lambda i: (0, 0)),
        ],
        out_specs=pl.BlockSpec((tb, L), lambda i: (i, 0)),
        compiler_params=pltpu.CompilerParams(dimension_semantics=("parallel",)),
    )(text2d, img2d, fused["w_text_big"], fused["w_img_big"],
      fused["w_e2"], fused["w_head"], fused["bias"])

    return out[:bs]


# -------------------------------- parameters -------------------------------------
def init_params(key, word_dim, feat_dim, embed_dim, num_labels):
    # Deterministic PyTorch-nn.Linear-style init: U(-1/sqrt(fan_in), 1/sqrt(fan_in)).
    def linear(k, fan_in, fan_out):
        kw, kb = jax.random.split(k)
        bound = 1.0 / math.sqrt(fan_in)
        w = jax.random.uniform(kw, (fan_in, fan_out), jnp.float32, -bound, bound)
        b = jax.random.uniform(kb, (1, fan_out), jnp.float32, -bound, bound)
        return w, b

    keys = jax.random.split(key, 6)
    p = {}
    p["w_map"], p["b_map"] = linear(keys[0], 2, feat_dim)                 # PositionalEncodingImageGrid.map
    p["w_text"], p["b_text"] = linear(keys[1], word_dim, embed_dim)       # map_text
    p["w_img"], p["b_img"] = linear(keys[2], feat_dim, embed_dim)         # map_image
    p["w_e1"], p["b_e1"] = linear(keys[3], embed_dim, embed_dim)          # map_to_embed_1
    p["w_e2"], p["b_e2"] = linear(keys[4], embed_dim, embed_dim // 2)     # map_to_embed_2
    p["w_head"], p["b_head"] = linear(keys[5], embed_dim // 2, num_labels)  # multi_label_class_head
    # TODO(synk): self.joint_transformer (nn.TransformerEncoder) is constructed in __init__
    # but never called in forward(), so its parameters are intentionally omitted.
    return p


# ------------------------------ pure-JAX reference --------------------------------
def reference(params, text, image, grid_n):
    # Mirrors the PyTorch forward order exactly (Linear then mean).
    bs = text.shape[0]
    t = jnp.transpose(text, (1, 0, 2))                                    # (seq, bs, wd)
    t = t @ params["w_text"] + params["b_text"]
    t = jnp.mean(t, axis=0)                                               # (bs, E)

    img = image.reshape(bs, image.shape[1], -1).transpose(2, 0, 1)        # (n2, bs, C)
    ct = jnp.asarray(build_coord_tensor(grid_n))
    pos = ct @ params["w_map"] + params["b_map"]                          # (n2, C)
    img = img + pos[:, None, :]
    img = img @ params["w_img"] + params["b_img"]
    img = jnp.mean(img, axis=0)                                           # (bs, E)

    emb = (t + img) / 2.0
    lrelu = lambda v: jnp.where(v >= 0, v, 0.1 * v)
    h1 = lrelu(emb @ params["w_e1"] + params["b_e1"])
    h2 = lrelu(h1 @ params["w_e2"] + params["b_e2"])
    logits = h2 @ params["w_head"] + params["b_head"]
    return jax.nn.sigmoid(logits)


# ------------------------------------ main -----------------------------------------
if __name__ == "__main__":
    bs, seq = 2, 8
    word_dim = 32       # cfg['text-model']['word-dim']
    embed_dim = 32      # cfg['model']['embed-dim']
    feat_dim = 16       # cfg['image-model']['feat-dim']
    grid_n = 4          # cfg['image-model']['grid'] == (4, 4)
    num_labels = 8      # len(labels)

    key = jax.random.PRNGKey(0)
    kp, kt, ki = jax.random.split(key, 3)
    params = init_params(kp, word_dim, feat_dim, embed_dim, num_labels)
    fused = pack_params(params, seq, grid_n)       # one-time fusion (not in the hot path)

    text = jax.random.normal(kt, (bs, seq, word_dim), jnp.float32)
    text_len = jnp.full((bs,), seq, jnp.int32)                            # unused by forward
    image = jax.random.normal(ki, (bs, feat_dim, grid_n, grid_n), jnp.float32)  # NCHW

    # 1) exact f32 path vs. the PyTorch-order reference
    out_f32 = jax.block_until_ready(
        forward(fused, text, text_len, image, input_dtype=jnp.float32))
    ref = reference(params, text, image, grid_n)
    assert out_f32.shape == (bs, num_labels)
    np.testing.assert_allclose(np.asarray(out_f32), np.asarray(ref), atol=5e-5, rtol=0)

    # 2) bf16-input (HBM-saving) path: kernel math is still f32; compare against the
    #    reference fed the same bf16-rounded inputs to isolate kernel correctness.
    out_bf16 = jax.block_until_ready(
        forward(fused, text, text_len, image, input_dtype=jnp.bfloat16))
    text_r = text.astype(jnp.bfloat16).astype(jnp.float32)
    image_r = image.astype(jnp.bfloat16).astype(jnp.float32)
    ref_r = reference(params, text_r, image_r, grid_n)
    np.testing.assert_allclose(np.asarray(out_bf16), np.asarray(ref_r), atol=1e-4, rtol=0)

    # 3) non-multiple batch: exercises zero-padding + multi-step "parallel" grid
    bs2 = 20
    kt2, ki2 = jax.random.split(jax.random.PRNGKey(1))
    text2 = jax.random.normal(kt2, (bs2, seq, word_dim), jnp.float32)
    image2 = jax.random.normal(ki2, (bs2, feat_dim, grid_n, grid_n), jnp.float32)
    out2 = jax.block_until_ready(
        forward(fused, text2, jnp.full((bs2,), seq, jnp.int32), image2,
                input_dtype=jnp.float32))
    ref2 = reference(params, text2, image2, grid_n)
    np.testing.assert_allclose(np.asarray(out2), np.asarray(ref2), atol=5e-5, rtol=0)

    print("KERNEL_OK")
</pallas_src>

<mosaic_0001>
module attributes {stable_mosaic.version = 11 : i64} {
  func.func @kernel(%arg0: i32, %arg1: memref<2x256xf32, #tpu.memory_space<vmem>>, %arg2: memref<2x256xf32, #tpu.memory_space<vmem>>, %arg3: memref<256x32xf32, #tpu.memory_space<vmem>>, %arg4: memref<256x32xf32, #tpu.memory_space<vmem>>, %arg5: memref<32x16xf32, #tpu.memory_space<vmem>>, %arg6: memref<16x8xf32, #tpu.memory_space<vmem>>, %arg7: memref<8x32xf32, #tpu.memory_space<vmem>>, %arg8: memref<2x8xf32, #tpu.memory_space<vmem>>) attributes {dimension_semantics = [#tpu.dimension_semantics<parallel>], iteration_bounds = array<i64: 1>, scalar_prefetch = 0 : i64, scratch_operands = 0 : i64, tpu.core_type = #tpu.core_type<tc>, window_params = [{transform_indices = @transform_0, window_bounds = array<i64: 2, 256>}, {transform_indices = @transform_1, window_bounds = array<i64: 2, 256>}, {pipeline_mode = #tpu.pipeline_mode<synchronous>, transform_indices = @transform_2, window_bounds = array<i64: 256, 32>}, {pipeline_mode = #tpu.pipeline_mode<synchronous>, transform_indices = @transform_3, window_bounds = array<i64: 256, 32>}, {pipeline_mode = #tpu.pipeline_mode<synchronous>, transform_indices = @transform_4, window_bounds = array<i64: 32, 16>}, {pipeline_mode = #tpu.pipeline_mode<synchronous>, transform_indices = @transform_5, window_bounds = array<i64: 16, 8>}, {pipeline_mode = #tpu.pipeline_mode<synchronous>, transform_indices = @transform_6, window_bounds = array<i64: 8, 32>}, {transform_indices = @transform_7, window_bounds = array<i64: 2, 8>}]} {
    %c0 = arith.constant 0 : index
    %c0_0 = arith.constant 0 : index
    %0 = vector.load %arg1[%c0, %c0_0] : memref<2x256xf32, #tpu.memory_space<vmem>>, vector<2x256xf32>
    %c0_1 = arith.constant 0 : index
    %c0_2 = arith.constant 0 : index
    %1 = vector.load %arg2[%c0_1, %c0_2] : memref<2x256xf32, #tpu.memory_space<vmem>>, vector<2x256xf32>
    %c0_3 = arith.constant 0 : index
    %c0_4 = arith.constant 0 : index
    %2 = vector.load %arg3[%c0_3, %c0_4] : memref<256x32xf32, #tpu.memory_space<vmem>>, vector<256x32xf32>
    %cst = arith.constant dense<0.000000e+00> : vector<2x32xf32>
    %3 = tpu.matmul %0, %2, %cst {dimension_numbers = #tpu.dot_dimension_numbers<[1], [0], [0], [1], [0, 0, 1, 1], [], []>} : vector<2x256xf32>, vector<256x32xf32>, vector<2x32xf32> -> vector<2x32xf32>
    %c0_5 = arith.constant 0 : index
    %c0_6 = arith.constant 0 : index
    %4 = vector.load %arg4[%c0_5, %c0_6] : memref<256x32xf32, #tpu.memory_space<vmem>>, vector<256x32xf32>
    %cst_7 = arith.constant dense<0.000000e+00> : vector<2x32xf32>
    %5 = tpu.matmul %1, %4, %cst_7 {dimension_numbers = #tpu.dot_dimension_numbers<[1], [0], [0], [1], [0, 0, 1, 1], [], []>} : vector<2x256xf32>, vector<256x32xf32>, vector<2x32xf32> -> vector<2x32xf32>
    %6 = arith.addf %3, %5 : vector<2x32xf32>
    %c0_8 = arith.constant 0 : index
    %c0_9 = arith.constant 0 : index
    %7 = vector.load %arg7[%c0_8, %c0_9] : memref<8x32xf32, #tpu.memory_space<vmem>>, vector<1x32xf32>
    %8 = vector.broadcast %7 : vector<1x32xf32> to vector<2x32xf32>
    %9 = arith.addf %6, %8 : vector<2x32xf32>
    %cst_10 = arith.constant 0.000000e+00 : f32
    %10 = vector.broadcast %cst_10 : f32 to vector<2x32xf32>
    %11 = arith.cmpf oge, %9, %10 : vector<2x32xf32>
    %cst_11 = arith.constant 1.000000e-01 : f32
    %12 = vector.broadcast %cst_11 : f32 to vector<2x32xf32>
    %13 = arith.mulf %12, %9 : vector<2x32xf32>
    %14 = arith.select %11, %9, %13 : vector<2x32xi1>, vector<2x32xf32>
    %c0_12 = arith.constant 0 : index
    %c0_13 = arith.constant 0 : index
    %15 = vector.load %arg5[%c0_12, %c0_13] : memref<32x16xf32, #tpu.memory_space<vmem>>, vector<32x16xf32>
    %cst_14 = arith.constant dense<0.000000e+00> : vector<2x16xf32>
    %16 = tpu.matmul %14, %15, %cst_14 {dimension_numbers = #tpu.dot_dimension_numbers<[1], [0], [0], [1], [0, 0, 1, 1], [], []>} : vector<2x32xf32>, vector<32x16xf32>, vector<2x16xf32> -> vector<2x16xf32>
    %c1 = arith.constant 1 : index
    %c0_15 = arith.constant 0 : index
    %17 = vector.load %arg7[%c1, %c0_15] : memref<8x32xf32, #tpu.memory_space<vmem>>, vector<1x16xf32>
    %18 = vector.broadcast %17 : vector<1x16xf32> to vector<2x16xf32>
    %19 = arith.addf %16, %18 : vector<2x16xf32>
    %cst_16 = arith.constant 0.000000e+00 : f32
    %20 = vector.broadcast %cst_16 : f32 to vector<2x16xf32>
    %21 = arith.cmpf oge, %19, %20 : vector<2x16xf32>
    %cst_17 = arith.constant 1.000000e-01 : f32
    %22 = vector.broadcast %cst_17 : f32 to vector<2x16xf32>
    %23 = arith.mulf %22, %19 : vector<2x16xf32>
    %24 = arith.select %21, %19, %23 : vector<2x16xi1>, vector<2x16xf32>
    %c0_18 = arith.constant 0 : index
    %c0_19 = arith.constant 0 : index
    %25 = vector.load %arg6[%c0_18, %c0_19] : memref<16x8xf32, #tpu.memory_space<vmem>>, vector<16x8xf32>
    %cst_20 = arith.constant dense<0.000000e+00> : vector<2x8xf32>
    %26 = tpu.matmul %24, %25, %cst_20 {dimension_numbers = #tpu.dot_dimension_numbers<[1], [0], [0], [1], [0, 0, 1, 1], [], []>} : vector<2x16xf32>, vector<16x8xf32>, vector<2x8xf32> -> vector<2x8xf32>
    %c2 = arith.constant 2 : index
    %c0_21 = arith.constant 0 : index
    %27 = vector.load %arg7[%c2, %c0_21] : memref<8x32xf32, #tpu.memory_space<vmem>>, vector<1x8xf32>
    %28 = vector.broadcast %27 : vector<1x8xf32> to vector<2x8xf32>
    %29 = arith.addf %26, %28 : vector<2x8xf32>
    %30 = arith.negf %29 : vector<2x8xf32>
    %31 = math.exp %30 : vector<2x8xf32>
    %cst_22 = arith.constant 1.000000e+00 : f32
    %32 = vector.broadcast %cst_22 : f32 to vector<2x8xf32>
    %33 = arith.addf %32, %31 : vector<2x8xf32>
    %34 = arith.divf %32, %33 : vector<2x8xf32>
    %c0_23 = arith.constant 0 : index
    %c0_24 = arith.constant 0 : index
    %35 = vector.load %arg8[%c0_23, %c0_24] : memref<2x8xf32, #tpu.memory_space<vmem>>, vector<2x8xf32>
    tpu.vector_store %arg8[%c0_23, %c0_24], %34 {strides = array<i32>} : memref<2x8xf32, #tpu.memory_space<vmem>>, vector<2x8xf32>,
    return
  }
  func.func @transform_0(%arg0: i32) -> (i32, i32) {
    %c0_i32 = arith.constant 0 : i32
    %c0_i32_0 = arith.constant 0 : i32
    return %arg0, %c0_i32 : i32, i32
  }
  func.func @transform_1(%arg0: i32) -> (i32, i32) {
    %c0_i32 = arith.constant 0 : i32
    %c0_i32_0 = arith.constant 0 : i32
    return %arg0, %c0_i32 : i32, i32
  }
  func.func @transform_2(%arg0: i32) -> (i32, i32) {
    %c0_i32 = arith.constant 0 : i32
    %c0_i32_0 = arith.constant 0 : i32
    %c0_i32_1 = arith.constant 0 : i32
    return %c0_i32, %c0_i32_0 : i32, i32
  }
  func.func @transform_3(%arg0: i32) -> (i32, i32) {
    %c0_i32 = arith.constant 0 : i32
    %c0_i32_0 = arith.constant 0 : i32
    %c0_i32_1 = arith.constant 0 : i32
    return %c0_i32, %c0_i32_0 : i32, i32
  }
  func.func @transform_4(%arg0: i32) -> (i32, i32) {
    %c0_i32 = arith.constant 0 : i32
    %c0_i32_0 = arith.constant 0 : i32
    %c0_i32_1 = arith.constant 0 : i32
    return %c0_i32, %c0_i32_0 : i32, i32
  }
  func.func @transform_5(%arg0: i32) -> (i32, i32) {
    %c0_i32 = arith.constant 0 : i32
    %c0_i32_0 = arith.constant 0 : i32
    %c0_i32_1 = arith.constant 0 : i32
    return %c0_i32, %c0_i32_0 : i32, i32
  }
  func.func @transform_6(%arg0: i32) -> (i32, i32) {
    %c0_i32 = arith.constant 0 : i32
    %c0_i32_0 = arith.constant 0 : i32
    %c0_i32_1 = arith.constant 0 : i32
    return %c0_i32, %c0_i32_0 : i32, i32
  }
  func.func @transform_7(%arg0: i32) -> (i32, i32) {
    %c0_i32 = arith.constant 0 : i32
    %c0_i32_0 = arith.constant 0 : i32
    return %arg0, %c0_i32 : i32, i32
  }
}

</mosaic_0001>

<bundles_post_ra>
// kernel: tpu_custom_call.1
= control target key start
LH: loop header
LB: loop body
LE: loop exit
PB: predicated region body
PF: predicated region fallthrough
CT: control target
= control target key end

     0   :  { %s857_s0 = inlined_call_operand.vmem [shape: f32[2,256], index: 0, kind: input, shape index: {}]   ;;  %s858_s1 = inlined_call_operand.vmem [shape: f32[2,256], index: 1, kind: input, shape index: {}]   ;;  %s859_s2 = inlined_call_operand.vmem [shape: f32[256,32], index: 2, kind: input, shape index: {}]   ;;  %s860_s3 = inlined_call_operand.vmem [shape: f32[256,32], index: 3, kind: input, shape index: {}]   ;;  %s861_s4 = inlined_call_operand.vmem [shape: f32[32,16], index: 4, kind: input, shape index: {}]   ;;  %s862_s5 = inlined_call_operand.vmem [shape: f32[16,8], index: 5, kind: input, shape index: {}]   ;;  %s863_s6 = inlined_call_operand.vmem [shape: f32[8,32], index: 6, kind: input, shape index: {}]   ;;  %s864_s7 = inlined_call_operand.hbm [shape: f32[2,8], index: 7, kind: output, shape index: {}]  }
   0x1   :  { %v92_v0 = vld [vmem:[%s860_s3 + $0xf8] sm:$0xff]  ;;  %v91_v4 = vld [vmem:[%s860_s3 + $0xf0] sm:$0xff]  ;;  %v90_v8 = vld [vmem:[%s860_s3 + $0xe8] sm:$0xff] }
   0x2   :  { %v60_v1 = vld [vmem:[%s859_s2 + $0xf8] sm:$0xff]  ;;  %461 = vmatprep.subr.mxu0 %v92_v0  ;;  %v59_v5 = vld [vmem:[%s859_s2 + $0xf0] sm:$0xff]  ;;  %v58_v9 = vld [vmem:[%s859_s2 + $0xe8] sm:$0xff] }
   0x3   :  { %v76_v2 = vld [vmem:[%s860_s3 + $0x78] sm:$0xff]  ;;  %496 = vmatprep.subr.mxu1 %v60_v1  ;;  %v75_v6 = vld [vmem:[%s860_s3 + $0x70] sm:$0xff]  ;;  %v74_v10 = vld [vmem:[%s860_s3 + $0x68] sm:$0xff] }
   0x4   :  { %v44_v3 = vld [vmem:[%s859_s2 + $0x78] sm:$0xff]  ;;  %462 = vmatpush3.msra.mxu0 %v76_v2  ;;  %v43_v7 = vld [vmem:[%s859_s2 + $0x70] sm:$0xff]  ;;  %v42_v11 = vld [vmem:[%s859_s2 + $0x68] sm:$0xff] }
   0x5   :  { %497 = vmatpush3.msra.mxu1 %v44_v3  ;;  %463 = vmatprep.subr.mxu0 %v91_v4  ;;  %v89_v12 = vld [vmem:[%s860_s3 + $0xe0] sm:$0xff]  ;;  %v88_v16 = vld [vmem:[%s860_s3 + $0xd8] sm:$0xff]  ;;  %v87_v20 = vld [vmem:[%s860_s3 + $0xd0] sm:$0xff] }
   0x6   :  { %498 = vmatprep.subr.mxu1 %v59_v5  ;;  %464 = vmatpush3.msra.mxu0 %v75_v6  ;;  %v57_v13 = vld [vmem:[%s859_s2 + $0xe0] sm:$0xff]  ;;  %v56_v17 = vld [vmem:[%s859_s2 + $0xd8] sm:$0xff]  ;;  %v55_v21 = vld [vmem:[%s859_s2 + $0xd0] sm:$0xff] }
   0x7   :  { %499 = vmatpush3.msra.mxu1 %v43_v7  ;;  %465 = vmatprep.subr.mxu0 %v90_v8  ;;  %v73_v14 = vld [vmem:[%s860_s3 + $0x60] sm:$0xff]  ;;  %v72_v18 = vld [vmem:[%s860_s3 + $0x58] sm:$0xff]  ;;  %v71_v22 = vld [vmem:[%s860_s3 + $0x50] sm:$0xff] }
   0x8   :  { %500 = vmatprep.subr.mxu1 %v58_v9  ;;  %v41_v15 = vld [vmem:[%s859_s2 + $0x60] sm:$0xff]  ;;  %466 = vmatpush3.msra.mxu0 %v74_v10  ;;  %v40_v19 = vld [vmem:[%s859_s2 + $0x58] sm:$0xff]  ;;  %v39_v23 = vld [vmem:[%s859_s2 + $0x50] sm:$0xff] }
   0x9   :  { %501 = vmatpush3.msra.mxu1 %v42_v11  ;;  %467 = vmatprep.subr.mxu0 %v89_v12  ;;  %v86_v24 = vld [vmem:[%s860_s3 + $0xc8] sm:$0xff]  ;;  %v85_v28 = vld [vmem:[%s860_s3 + $0xc0] sm:$0xff]  ;;  %v84_v32 = vld [vmem:[%s860_s3 + $0xb8] sm:$0xff] }
   0xa   :  { %502 = vmatprep.subr.mxu1 %v57_v13  ;;  %468 = vmatpush3.msra.mxu0 %v73_v14  ;;  %v54_v25 = vld [vmem:[%s859_s2 + $0xc8] sm:$0xff]  ;;  %v53_v29 = vld [vmem:[%s859_s2 + $0xc0] sm:$0xff]  ;;  %v52_v33 = vld [vmem:[%s859_s2 + $0xb8] sm:$0xff] }
   0xb   :  { %503 = vmatpush3.msra.mxu1 %v41_v15  ;;  %469 = vmatprep.subr.mxu0 %v88_v16  ;;  %v70_v26 = vld [vmem:[%s860_s3 + $0x48] sm:$0xff]  ;;  %v69_v30 = vld [vmem:[%s860_s3 + $0x40] sm:$0xff]  ;;  %v68_v34 = vld [vmem:[%s860_s3 + $0x38] sm:$0xff] }
   0xc   :  { %504 = vmatprep.subr.mxu1 %v56_v17  ;;  %470 = vmatpush3.msra.mxu0 %v72_v18  ;;  %v38_v27 = vld [vmem:[%s859_s2 + $0x48] sm:$0xff]  ;;  %v37_v31 = vld [vmem:[%s859_s2 + $0x40] sm:$0xff]  ;;  %v36_v35 = vld [vmem:[%s859_s2 + $0x38] sm:$0xff] }
   0xd   :  { %505 = vmatpush3.msra.mxu1 %v40_v19  ;;  %471 = vmatprep.subr.mxu0 %v87_v20  ;;  %v83_v36 = vld [vmem:[%s860_s3 + $0xb0] sm:$0xff]  ;;  %v82_v40 = vld [vmem:[%s860_s3 + $0xa8] sm:$0xff]  ;;  %v81_v44 = vld [vmem:[%s860_s3 + $0xa0] sm:$0xff] }
   0xe   :  { %506 = vmatprep.subr.mxu1 %v55_v21  ;;  %472 = vmatpush3.msra.mxu0 %v71_v22  ;;  %v51_v37 = vld [vmem:[%s859_s2 + $0xb0] sm:$0xff]  ;;  %v50_v41 = vld [vmem:[%s859_s2 + $0xa8] sm:$0xff]  ;;  %v49_v45 = vld [vmem:[%s859_s2 + $0xa0] sm:$0xff] }
   0xf   :  { %507 = vmatpush3.msra.mxu1 %v39_v23  ;;  %473 = vmatprep.subr.mxu0 %v86_v24  ;;  %v67_v38 = vld [vmem:[%s860_s3 + $0x30] sm:$0xff]  ;;  %v66_v42 = vld [vmem:[%s860_s3 + $0x28] sm:$0xff]  ;;  %v65_v46 = vld [vmem:[%s860_s3 + $0x20] sm:$0xff] }
  0x10   :  { %508 = vmatprep.subr.mxu1 %v54_v25  ;;  %474 = vmatpush3.msra.mxu0 %v70_v26  ;;  %v35_v39 = vld [vmem:[%s859_s2 + $0x30] sm:$0xff]  ;;  %v34_v43 = vld [vmem:[%s859_s2 + $0x28] sm:$0xff]  ;;  %v33_v47 = vld [vmem:[%s859_s2 + $0x20] sm:$0xff] }
  0x11   :  { %509 = vmatpush3.msra.mxu1 %v38_v27  ;;  %475 = vmatprep.subr.mxu0 %v85_v28  ;;  %v80_v48 = vld [vmem:[%s860_s3 + $0x98] sm:$0xff] }
  0x12   :  { %510 = vmatprep.subr.mxu1 %v53_v29  ;;  %476 = vmatpush3.msra.mxu0 %v69_v30  ;;  %v48_v49 = vld [vmem:[%s859_s2 + $0x98] sm:$0xff] }
  0x13   :  { %511 = vmatpush3.msra.mxu1 %v37_v31  ;;  %477 = vmatprep.subr.mxu0 %v84_v32 }
  0x14   :  { %512 = vmatprep.subr.mxu1 %v52_v33  ;;  %478 = vmatpush3.msra.mxu0 %v68_v34 }
  0x15   :  { %513 = vmatpush3.msra.mxu1 %v36_v35  ;;  %479 = vmatprep.subr.mxu0 %v83_v36 }
  0x16   :  { %514 = vmatprep.subr.mxu1 %v51_v37  ;;  %480 = vmatpush3.msra.mxu0 %v67_v38 }
  0x17   :  { %515 = vmatpush3.msra.mxu1 %v35_v39  ;;  %481 = vmatprep.subr.mxu0 %v82_v40 }
  0x18   :  { %516 = vmatprep.subr.mxu1 %v50_v41  ;;  %482 = vmatpush3.msra.mxu0 %v66_v42 }
  0x19   :  { %517 = vmatpush3.msra.mxu1 %v34_v43 }
  0x1a   :  { %12 = vsyncpa [#allocation3], 0  ;;  %483 = vmatprep.subr.mxu0 %v81_v44  ;;  %518 = vmatprep.subr.mxu1 %v49_v45  ;;  %v64_v50 = vld [vmem:[%s860_s3 + $0x18] sm:$0xff]  ;;  %v79_v52 = vld [vmem:[%s860_s3 + $0x90] sm:$0xff]  ;;  %v586_v4 = vmov 0.0   ;;  %vm587_vm0 = vmmov 0  }
  0x1b   :  { %v32_v51 = vld [vmem:[%s859_s2 + $0x18] sm:$0xff]  ;;  %484 = vmatpush3.msra.mxu0 %v65_v46  ;;  %519 = vmatpush3.msra.mxu1 %v33_v47  ;;  %v47_v53 = vld [vmem:[%s859_s2 + $0x90] sm:$0xff]  ;;  %v453_v56 = vld.sshfl [vmem:[%s858_s1] sm:$0x33 pattern:$0x76325410] }
  0x1c   :  { %485 = vmatprep.subr.mxu0 %v80_v48  ;;  %520 = vmatprep.subr.mxu1 %v48_v49  ;;  %v63_v54 = vld [vmem:[%s860_s3 + $0x10] sm:$0xff]  ;;  %v78_v57 = vld [vmem:[%s860_s3 + $0x88] sm:$0xff]  ;;  %v454_v59 = vld.sshfl [vmem:[%s857_s0] sm:$0x33 pattern:$0x76325410]  ;;  %v101_v0 = vcombine.high %v453_v56, %v453_v56 }
  0x1d   :  { %v31_v55 = vld [vmem:[%s859_s2 + $0x10] sm:$0xff]  ;;  %486 = vmatpush3.msra.mxu0 %v64_v50  ;;  %521 = vmatpush3.msra.mxu1 %v32_v51  ;;  %v46_v58 = vld [vmem:[%s859_s2 + $0x88] sm:$0xff]  ;;  %v77_v62 = vld [vmem:[%s860_s3 + $0x80] sm:$0xff]  ;;  %v182_v2 = vcombine.high %v454_v59, %v454_v59  ;;  %vm273_vm2 = vcmask 261120   ;;  %vm357_vm4 = vcmask 130048   ;;  %vm437_vm5 = vcmask 58368  }
  0x1e   :  { %487 = vmatprep.subr.mxu0 %v79_v52  ;;  %522 = vmatprep.subr.mxu1 %v47_v53  ;;  %v62_v60 = vld [vmem:[%s860_s3 + $0x8] sm:$0xff]  ;;  %v45_v63 = vld [vmem:[%s859_s2 + $0x80] sm:$0xff]  ;;  %v267_v5 = vld [vmem:[%s861_s4 + $0x18] sm:$0xff] }
  0x1f   :  { %v30_v61 = vld [vmem:[%s859_s2 + $0x8] sm:$0xff]  ;;  %488 = vmatpush3.msra.mxu0 %v63_v54  ;;  %523 = vmatpush3.msra.mxu1 %v31_v55  ;;  %v61_v1 = vld [vmem:[%s860_s3] sm:$0xff]  ;;  %v266_v6 = vld [vmem:[%s861_s4 + $0x10] sm:$0xff] }
  0x20   :  { %489 = vmatprep.subr.mxu0 %v78_v57  ;;  %524 = vmatprep.subr.mxu1 %v46_v58  ;;  %v29_v3 = vld [vmem:[%s859_s2] sm:$0xff]  ;;  %v265_v7 = vld [vmem:[%s861_s4 + $0x8] sm:$0xff] }
  0x21   :  { %490 = vmatpush3.msra.mxu0 %v62_v60  ;;  %525 = vmatpush3.msra.mxu1 %v30_v61  ;;  %v264_v8 = vld [vmem:[%s861_s4] sm:$0xff]  ;;  %v351_v20 = vld [vmem:[%s862_s5 + $0x8] sm:$0xff] }
  0x22   :  { %491 = vmatprep.subr.mxu0 %v77_v62  ;;  %526 = vmatprep.subr.mxu1 %v45_v63  ;;  %v455_v15 = vld [vmem:[%s863_s6] ss:$0 sm:$0xff]  ;;  %v456_v22 = vld [vmem:[%s863_s6 + $0x1] ss:$0 sm:$0xff]  ;;  %v458_v28 = vld [vmem:[%s863_s6 + $0x2] ss:$0 sm:$0xff] }
  0x23   :  { %492 = vmatpush3.msra.mxu0 %v61_v1  ;;  %168 = vmatprep.mubr.f32.mxu0 %v101_v0  ;;  %v350_v21 = vld [vmem:[%s862_s5] sm:$0xff]  ;;  %s588_s5 = smov [#allocation2]  }
  0x24   :  { %527 = vmatpush3.msra.mxu1 %v29_v3  ;;  %249 = vmatprep.mubr.f32.mxu1 %v182_v2  ;;  %s445_s1 = sshll.u32 %s588_s5, 4  ;;  %s446_s1 = int_to_ptr.vmem [resolvable:$true] %s445_s1 }
  0x25   :  { %169 = vmatmul.mubr.f32.vlgmr.msra.gmra.mxu0 %v453_v56  ;;  %250 = vmatmul.mubr.f32.vlgmr.msra.gmra.mxu1 %v454_v59  ;;  %s564_s8 = scalar_lea.vmem %s446_s1, 32  ;;  %p569_p1 = scmp.lt.s32.totalorder %s446_s1, %s446_s1 }
  0x26   :  { %539 = vmatprep.subr.mxu0 %v586_v4  ;;  %550 = vmatprep.subr.mxu1 %v586_v4  ;;  %p565_p0 = scmp.ne.s32.totalorder %s446_s1, %s564_s8  ;;  %p570_p2 = scmp.lt.s32.totalorder %s564_s8, %s564_s8 }
  0x27   :  { %540 = vmatpush3.msra.mxu0 %v267_v5  ;;  %547 = vmatprep.mubr.msk.f32.mxu0 %vm587_vm0, %v586_v4 }
  0x28   :  { %541 = vmatprep.subr.mxu0 %v586_v4  ;;  %554 = vmatprep.mubr.msk.f32.mxu1 %vm587_vm0, %v586_v4  ;;  %p571_p3 = por %p570_p2, %p569_p1 }
  0x29   :  { %542 = vmatpush3.msra.mxu0 %v266_v6  ;;  %551 = vmatpush3.msra.mxu1 %v351_v20 }
  0x2a   :  { %543 = vmatprep.subr.mxu0 %v586_v4  ;;  %552 = vmatprep.subr.mxu1 %v586_v4  ;;  %p572_p4 = pnand %p571_p3, %p565_p0 }
  0x2b   :  { %544 = vmatpush3.msra.mxu0 %v265_v7  ;;  %553 = vmatpush3.msra.mxu1 %v350_v21 }
  0x2c   :  { %545 = vmatprep.subr.mxu0 %v586_v4 }
  0x2d   :  { %546 = vmatpush3.msra.mxu0 %v264_v8 }
  0xe5   :  { %v493_v9 = vpop.f32.mrf.mxu0  ;;  %v528_v10 = vpop.f32.mrf.mxu1 }
  0xe7   :  { %v494_v11 = vpop.f32.mrf.mxu0  ;;  %v529_v12 = vpop.f32.mrf.mxu1 }
  0xe8   :  { %v495_v13 = vadd.f32 %v494_v11, %v493_v9  ;;  %v530_v14 = vadd.f32 %v529_v12, %v528_v10 }
  0xea   :  { %v252_v16 = vadd.f32 %v530_v14, %v495_v13 }
  0xec   :  { %v260_v17 = vadd.f32 %v455_v15, %v252_v16 }
  0xee   :  { %v262_v18 = vmul.f32 0.1, %v260_v17  ;;  %vm261_vm1 = vcmp.ge.f32.partialorder %v260_v17, 0.0 }
  0xf0   :  { %v263_v19 = vsel %vm261_vm1, %v260_v17, %v262_v18 }
  0xf1   :  { %548 = vmatmul.mubr.msk.f32.vlgmr.msra.gmra.mxu0 %vm273_vm2, %v263_v19 }
 0x1b1   :  { %v343_v23 = vpop.f32.mrf.mxu0 }
 0x1b2   :  { %v344_v24 = vadd.f32 %v456_v22, %v343_v23 }
 0x1b3   :  { %v549_v25 = vpop.f32.mrf.mxu0 }
 0x1b4   :  { %vm347_vm3 = vcmp.ge.f32.partialorder %v344_v24, 0.0  ;;  %v348_v26 = vmul.f32 0.1, %v344_v24 }
 0x1b6   :  { %v349_v27 = vsel %vm347_vm3, %v344_v24, %v348_v26 }
 0x1b7   :  { %555 = vmatmul.mubr.msk.f32.vlgmr.msra.gmra.mxu1 %vm357_vm4, %v349_v27 }
 0x277   :  { %v427_v29 = vpop.f32.mrf.mxu1 }
 0x278   :  { %v428_v30 = vadd.f32 %v458_v28, %v427_v29 }
 0x279   :  { %v556_v31 = vpop.f32.mrf.mxu1 }
 0x27a   :  { %v460_v32 = vmul.f32 -1.442695, %v428_v30 }
 0x27c   :  { %560 = vpow2.f32 %v460_v32 }
 0x289   :  { %v561_v33 = vpop.eup %560 }
 0x28a   :  { %v434_v34 = vadd.f32 1.0, %v561_v33 }
 0x28c   :  { %562 = vrcp.f32 %v434_v34 }
 0x299   :  { %v563_v35 = vpop.eup %562 }
 0x29a   :  { %438 = vst.msk [vmem:[#allocation2] sm:$0x3] %vm437_vm5, %v563_v35 }
 0x29b   :  { %575 = shalt.err (!%p572_p4)
}
 0x29c   :  { %448 = dma.vmem_to_hbm [thread:$0]  %s446_s1, 32, %s864_s7, [#allocation3]  }
 0x29d   :  { %584 = dma.done.wait [#allocation3], 32  }
 0x29e   :  { %585 = vsyncadd [#allocation3], 4294967264 }
 0x29f   :  { %452 = vsyncpa [#allocation3], 1 }

</bundles_post_ra>
